<compile_context>
chip_gen: v7x
topology: tpu7x:2x2x1
jax: 0.10.0
libtpu: 0.0.40
codegen_flags: <defaults>
</compile_context>

<pallas_src>
import functools

import jax
import jax.numpy as jnp
from jax import lax
from jax.experimental import pallas as pl
from jax.experimental.pallas import tpu as pltpu
import numpy as np


# Fast-path threshold: table must fit in VMEM with room for blocks/scratch.
# 16 MiB is conservative on every generation (incl. v7x's 64 MiB VMEM/TC).
_DEFAULT_TABLE_VMEM_BYTES = 16 * 1024 * 1024


def _layernorm_rows(e, gamma, beta, eps):
    # Two-pass variance (numerically safer than E[x^2] - E[x]^2).
    mu = jnp.mean(e, axis=-1, keepdims=True)
    d = e - mu
    var = jnp.mean(d * d, axis=-1, keepdims=True)
    inv = lax.rsqrt(var + eps)
    return d * inv * gamma + beta


def _embeddings_kernel_dma(ids_ref,      # SMEM (B, S) int32 (scalar prefetch)
                           word_hbm,     # HBM  (V, H)       (manual DMA gather)
                           pos_ref,      # VMEM (TS, H)      (resident across inner axis)
                           gamma_ref,    # VMEM (1, H)
                           beta_ref,     # VMEM (1, H)
                           out_ref,      # VMEM (TS, H)      (batch dim squeezed)
                           gather_buf,   # VMEM scratch (TS, H)
                           sems,         # DMA semaphores (2,)
                           *, ts, chunk, eps):
    t = pl.program_id(0)        # token-tile axis (outer)
    b = pl.program_id(1)        # batch axis (inner -> pos/gamma/beta stay put)
    base = t * ts
    n_chunks = ts // chunk

    def issue(c):
        # ids are read from SMEM here, before any .wait() on a previous chunk.
        cps = []
        r0 = c * chunk
        for i in range(chunk):
            r = r0 + i
            wid = ids_ref[b, base + r]          # pre-clamped in the wrapper
            cp = pltpu.make_async_copy(
                word_hbm.at[pl.ds(wid, 1), :],
                gather_buf.at[pl.ds(r, 1), :],
                sems.at[c % 2])
            cp.start()
            cps.append(cp)
        return cps

    gamma = gamma_ref[...].astype(jnp.float32)
    beta = beta_ref[...].astype(jnp.float32)

    inflight = {0: issue(0)}
    for c in range(n_chunks):
        # Issue chunk c+1 before waiting on chunk c so its row DMAs overlap
        # the wait + LayerNorm + store of chunk c.
        if c + 1 < n_chunks:
            inflight[c + 1] = issue(c + 1)
        for cp in inflight.pop(c):
            cp.wait()
        r0 = c * chunk
        e = (gather_buf[pl.ds(r0, chunk), :].astype(jnp.float32)
             + pos_ref[pl.ds(r0, chunk), :].astype(jnp.float32))
        y = _layernorm_rows(e, gamma, beta, eps)
        out_ref[pl.ds(r0, chunk), :] = y.astype(out_ref.dtype)
    # TODO(synk): dedup of repeated / padding token ids (skip redundant row DMAs)
    # not implemented; every row issues one descriptor.
    # TODO(synk): nn.Dropout omitted — identity in eval/inference mode.


def _embeddings_kernel_vmem(ids_ref,     # SMEM (B, S) int32 (scalar prefetch)
                            word_ref,    # VMEM (V, H) resident table
                            pos_ref,     # VMEM (TS, H)
                            gamma_ref,   # VMEM (1, H)
                            beta_ref,    # VMEM (1, H)
                            out_ref,     # VMEM (TS, H)
                            gather_buf,  # VMEM scratch (TS, H)
                            *, ts, eps):
    t = pl.program_id(0)
    b = pl.program_id(1)
    base = t * ts

    # Gather rows from the VMEM-resident table (no HBM DMAs per step).
    if ts <= 64:
        for i in range(ts):
            wid = ids_ref[b, base + i]
            gather_buf[pl.ds(i, 1), :] = word_ref[pl.ds(wid, 1), :]
    else:
        def body(i, carry):
            wid = ids_ref[b, base + i]
            gather_buf[pl.ds(i, 1), :] = word_ref[pl.ds(wid, 1), :]
            return carry
        lax.fori_loop(0, ts, body, 0)

    e = gather_buf[...].astype(jnp.float32) + pos_ref[...].astype(jnp.float32)
    y = _layernorm_rows(e, gamma_ref[...].astype(jnp.float32),
                        beta_ref[...].astype(jnp.float32), eps)
    out_ref[...] = y.astype(out_ref.dtype)
    # TODO(synk): nn.Dropout omitted — identity in eval/inference mode.


def _pick_token_tile(seq_len, max_tile=256):
    for ts in (256, 128, 64, 32, 16, 8):
        if ts <= max_tile and seq_len % ts == 0:
            return ts
    return seq_len


def _pick_chunk(ts):
    # Aim for 2-4 sub-chunks of >= 8 rows each (sublane-aligned slabs).
    for parts in (4, 2):
        if ts % parts == 0 and ts // parts >= 8:
            return ts // parts
    return ts


def embeddings_forward(input_ids, word_emb, pos_emb, gamma, beta, *,
                       eps=1e-12, out_dtype=None, use_vmem_table=None,
                       max_token_tile=256):
    B, S = input_ids.shape
    V, H = word_emb.shape
    P, _ = pos_emb.shape
    assert S <= P, "seq_len exceeds max_position_embeddings"

    out_dtype = word_emb.dtype if out_dtype is None else out_dtype
    TS = _pick_token_tile(S, max_token_tile)
    n_tiles = S // TS

    table_bytes = int(V) * int(H) * word_emb.dtype.itemsize
    if use_vmem_table is None:
        use_vmem_table = table_bytes <= _DEFAULT_TABLE_VMEM_BYTES

    # OOB-id guard hoisted out of the kernel (frees scalar-slot work per row).
    ids = jnp.clip(input_ids.astype(jnp.int32), 0, V - 1)

    gamma2 = gamma.reshape(1, H).astype(jnp.float32)
    beta2 = beta.reshape(1, H).astype(jnp.float32)

    # grid = (n_tiles, B): batch innermost, so pos/gamma/beta block indices are
    # constant across the inner loop and Pallas skips their re-DMA.
    pos_spec = pl.BlockSpec((TS, H), lambda s, b, ids_r: (s, 0))
    gamma_spec = pl.BlockSpec((1, H), lambda s, b, ids_r: (0, 0))
    beta_spec = pl.BlockSpec((1, H), lambda s, b, ids_r: (0, 0))
    out_spec = pl.BlockSpec((pl.Squeezed(), TS, H),
                            lambda s, b, ids_r: (b, s, 0))

    if use_vmem_table:
        kernel = functools.partial(_embeddings_kernel_vmem, ts=TS, eps=eps)
        word_spec = pl.BlockSpec((V, H), lambda s, b, ids_r: (0, 0))  # resident
        scratch = [pltpu.VMEM((TS, H), word_emb.dtype)]
        vmem_limit = int(min(table_bytes + (32 << 20), 64 << 20))
        params = pltpu.CompilerParams(
            dimension_semantics=("parallel", "parallel"),
            vmem_limit_bytes=vmem_limit)
    else:
        chunk = _pick_chunk(TS)
        kernel = functools.partial(_embeddings_kernel_dma,
                                   ts=TS, chunk=chunk, eps=eps)
        word_spec = pl.BlockSpec(memory_space=pl.ANY)        # table stays in HBM
        scratch = [pltpu.VMEM((TS, H), word_emb.dtype),
                   pltpu.SemaphoreType.DMA((2,))]
        params = pltpu.CompilerParams(
            dimension_semantics=("parallel", "parallel"))

    grid_spec = pltpu.PrefetchScalarGridSpec(
        num_scalar_prefetch=1,
        grid=(n_tiles, B),
        in_specs=[word_spec, pos_spec, gamma_spec, beta_spec],
        out_specs=out_spec,
        scratch_shapes=scratch,
    )

    return pl.pallas_call(
        kernel,
        out_shape=jax.ShapeDtypeStruct((B, S, H), out_dtype),
        grid_spec=grid_spec,
        compiler_params=params,
    )(ids, word_emb, pos_emb, gamma2, beta2)


def embeddings_reference(input_ids, word_emb, pos_emb, gamma, beta, eps=1e-12):
    B, S = input_ids.shape
    e = word_emb[input_ids] + pos_emb[jnp.arange(S)][None, :, :]
    mu = jnp.mean(e, axis=-1, keepdims=True)
    var = jnp.mean((e - mu) ** 2, axis=-1, keepdims=True)
    return (e - mu) / jnp.sqrt(var + eps) * gamma + beta


if __name__ == "__main__":
    layer_norm_eps = 1e-12

    def run_case(vocab, hidden, max_pos, batch, seq, key):
        k_word, k_pos, k_gamma, k_beta, k_ids = jax.random.split(key, 5)
        word_emb = 0.02 * jax.random.normal(k_word, (vocab, hidden), jnp.float32)
        # padding_idx=0 -> row 0 zeroed at init (matches nn.Embedding(padding_idx=0))
        word_emb = word_emb.at[0].set(0.0)
        pos_emb = 0.02 * jax.random.normal(k_pos, (max_pos, hidden), jnp.float32)
        g = 1.0 + 0.1 * jax.random.normal(k_gamma, (hidden,), jnp.float32)
        bta = 0.1 * jax.random.normal(k_beta, (hidden,), jnp.float32)
        ids = jax.random.randint(k_ids, (batch, seq), 0, vocab, dtype=jnp.int32)

        ref = embeddings_reference(ids, word_emb, pos_emb, g, bta,
                                   eps=layer_norm_eps)
        # Exercise both gather paths (VMEM-resident table and HBM DMA gather).
        for use_vmem in (True, False):
            out = embeddings_forward(ids, word_emb, pos_emb, g, bta,
                                     eps=layer_norm_eps,
                                     use_vmem_table=use_vmem)
            out = jax.block_until_ready(out)
            np.testing.assert_allclose(np.asarray(out), np.asarray(ref),
                                       rtol=1e-5, atol=1e-5)

    key = jax.random.PRNGKey(0)
    k1, k2 = jax.random.split(key)
    # Small BERT-like config (single sub-chunk).
    run_case(vocab=64, hidden=128, max_pos=16, batch=2, seq=8, key=k1)
    # Exercises the multi-chunk pipelined HBM gather (TS=64 -> 4 chunks of 16).
    run_case(vocab=512, hidden=256, max_pos=128, batch=2, seq=64, key=k2)

    print("KERNEL_OK")
</pallas_src>

<mosaic_0001>
module attributes {stable_mosaic.version = 11 : i64} {
  func.func @_embeddings_kernel_vmem(%arg0: i32, %arg1: i32, %arg2: memref<2x8xi32, #tpu.memory_space<smem>>, %arg3: memref<64x128xf32, #tpu.memory_space<vmem>>, %arg4: memref<8x128xf32, #tpu.memory_space<vmem>>, %arg5: memref<1x128xf32, #tpu.memory_space<vmem>>, %arg6: memref<1x128xf32, #tpu.memory_space<vmem>>, %arg7: memref<1x8x128xf32, #tpu.memory_space<vmem>>, %arg8: memref<8x128xf32, #tpu.memory_space<vmem>>) attributes {dimension_semantics = [#tpu.dimension_semantics<parallel>, #tpu.dimension_semantics<parallel>], iteration_bounds = array<i64: 1, 2>, scalar_prefetch = 1 : i64, scratch_operands = 1 : i64, tpu.core_type = #tpu.core_type<tc>, window_params = [{pipeline_mode = #tpu.pipeline_mode<synchronous>, transform_indices = @transform_0, window_bounds = array<i64: 64, 128>}, {transform_indices = @transform_1, window_bounds = array<i64: 8, 128>}, {pipeline_mode = #tpu.pipeline_mode<synchronous>, transform_indices = @transform_2, window_bounds = array<i64: 1, 128>}, {pipeline_mode = #tpu.pipeline_mode<synchronous>, transform_indices = @transform_3, window_bounds = array<i64: 1, 128>}, {transform_indices = @transform_4, window_bounds = array<i64: 1, 8, 128>}]} {
    %c8_i32 = arith.constant 8 : i32
    %0 = arith.muli %arg0, %c8_i32 : i32
    %c0_i32 = arith.constant 0 : i32
    %1 = arith.addi %0, %c0_i32 : i32
    %2 = arith.index_cast %arg1 : i32 to index
    %3 = arith.index_cast %1 : i32 to index
    %4 = memref.load %arg2[%2, %3] : memref<2x8xi32, #tpu.memory_space<smem>>
    %5 = arith.index_cast %4 : i32 to index
    %c0 = arith.constant 0 : index
    %6 = vector.load %arg3[%5, %c0] : memref<64x128xf32, #tpu.memory_space<vmem>>, vector<1x128xf32>
    %c0_0 = arith.constant 0 : index
    %c0_1 = arith.constant 0 : index
    %7 = vector.load %arg8[%c0_0, %c0_1] : memref<8x128xf32, #tpu.memory_space<vmem>>, vector<1x128xf32>
    tpu.vector_store %arg8[%c0_0, %c0_1], %6 {strides = array<i32>} : memref<8x128xf32, #tpu.memory_space<vmem>>, vector<1x128xf32>,
    %c1_i32 = arith.constant 1 : i32
    %8 = arith.addi %0, %c1_i32 : i32
    %9 = arith.index_cast %arg1 : i32 to index
    %10 = arith.index_cast %8 : i32 to index
    %11 = memref.load %arg2[%9, %10] : memref<2x8xi32, #tpu.memory_space<smem>>
    %12 = arith.index_cast %11 : i32 to index
    %c0_2 = arith.constant 0 : index
    %13 = vector.load %arg3[%12, %c0_2] : memref<64x128xf32, #tpu.memory_space<vmem>>, vector<1x128xf32>
    %c1 = arith.constant 1 : index
    %c0_3 = arith.constant 0 : index
    %14 = vector.load %arg8[%c1, %c0_3] : memref<8x128xf32, #tpu.memory_space<vmem>>, vector<1x128xf32>
    tpu.vector_store %arg8[%c1, %c0_3], %13 {strides = array<i32>} : memref<8x128xf32, #tpu.memory_space<vmem>>, vector<1x128xf32>,
    %c2_i32 = arith.constant 2 : i32
    %15 = arith.addi %0, %c2_i32 : i32
    %16 = arith.index_cast %arg1 : i32 to index
    %17 = arith.index_cast %15 : i32 to index
    %18 = memref.load %arg2[%16, %17] : memref<2x8xi32, #tpu.memory_space<smem>>
    %19 = arith.index_cast %18 : i32 to index
    %c0_4 = arith.constant 0 : index
    %20 = vector.load %arg3[%19, %c0_4] : memref<64x128xf32, #tpu.memory_space<vmem>>, vector<1x128xf32>
    %c2 = arith.constant 2 : index
    %c0_5 = arith.constant 0 : index
    %21 = vector.load %arg8[%c2, %c0_5] : memref<8x128xf32, #tpu.memory_space<vmem>>, vector<1x128xf32>
    tpu.vector_store %arg8[%c2, %c0_5], %20 {strides = array<i32>} : memref<8x128xf32, #tpu.memory_space<vmem>>, vector<1x128xf32>,
    %c3_i32 = arith.constant 3 : i32
    %22 = arith.addi %0, %c3_i32 : i32
    %23 = arith.index_cast %arg1 : i32 to index
    %24 = arith.index_cast %22 : i32 to index
    %25 = memref.load %arg2[%23, %24] : memref<2x8xi32, #tpu.memory_space<smem>>
    %26 = arith.index_cast %25 : i32 to index
    %c0_6 = arith.constant 0 : index
    %27 = vector.load %arg3[%26, %c0_6] : memref<64x128xf32, #tpu.memory_space<vmem>>, vector<1x128xf32>
    %c3 = arith.constant 3 : index
    %c0_7 = arith.constant 0 : index
    %28 = vector.load %arg8[%c3, %c0_7] : memref<8x128xf32, #tpu.memory_space<vmem>>, vector<1x128xf32>
    tpu.vector_store %arg8[%c3, %c0_7], %27 {strides = array<i32>} : memref<8x128xf32, #tpu.memory_space<vmem>>, vector<1x128xf32>,
    %c4_i32 = arith.constant 4 : i32
    %29 = arith.addi %0, %c4_i32 : i32
    %30 = arith.index_cast %arg1 : i32 to index
    %31 = arith.index_cast %29 : i32 to index
    %32 = memref.load %arg2[%30, %31] : memref<2x8xi32, #tpu.memory_space<smem>>
    %33 = arith.index_cast %32 : i32 to index
    %c0_8 = arith.constant 0 : index
    %34 = vector.load %arg3[%33, %c0_8] : memref<64x128xf32, #tpu.memory_space<vmem>>, vector<1x128xf32>
    %c4 = arith.constant 4 : index
    %c0_9 = arith.constant 0 : index
    %35 = vector.load %arg8[%c4, %c0_9] : memref<8x128xf32, #tpu.memory_space<vmem>>, vector<1x128xf32>
    tpu.vector_store %arg8[%c4, %c0_9], %34 {strides = array<i32>} : memref<8x128xf32, #tpu.memory_space<vmem>>, vector<1x128xf32>,
    %c5_i32 = arith.constant 5 : i32
    %36 = arith.addi %0, %c5_i32 : i32
    %37 = arith.index_cast %arg1 : i32 to index
    %38 = arith.index_cast %36 : i32 to index
    %39 = memref.load %arg2[%37, %38] : memref<2x8xi32, #tpu.memory_space<smem>>
    %40 = arith.index_cast %39 : i32 to index
    %c0_10 = arith.constant 0 : index
    %41 = vector.load %arg3[%40, %c0_10] : memref<64x128xf32, #tpu.memory_space<vmem>>, vector<1x128xf32>
    %c5 = arith.constant 5 : index
    %c0_11 = arith.constant 0 : index
    %42 = vector.load %arg8[%c5, %c0_11] : memref<8x128xf32, #tpu.memory_space<vmem>>, vector<1x128xf32>
    tpu.vector_store %arg8[%c5, %c0_11], %41 {strides = array<i32>} : memref<8x128xf32, #tpu.memory_space<vmem>>, vector<1x128xf32>,
    %c6_i32 = arith.constant 6 : i32
    %43 = arith.addi %0, %c6_i32 : i32
    %44 = arith.index_cast %arg1 : i32 to index
    %45 = arith.index_cast %43 : i32 to index
    %46 = memref.load %arg2[%44, %45] : memref<2x8xi32, #tpu.memory_space<smem>>
    %47 = arith.index_cast %46 : i32 to index
    %c0_12 = arith.constant 0 : index
    %48 = vector.load %arg3[%47, %c0_12] : memref<64x128xf32, #tpu.memory_space<vmem>>, vector<1x128xf32>
    %c6 = arith.constant 6 : index
    %c0_13 = arith.constant 0 : index
    %49 = vector.load %arg8[%c6, %c0_13] : memref<8x128xf32, #tpu.memory_space<vmem>>, vector<1x128xf32>
    tpu.vector_store %arg8[%c6, %c0_13], %48 {strides = array<i32>} : memref<8x128xf32, #tpu.memory_space<vmem>>, vector<1x128xf32>,
    %c7_i32 = arith.constant 7 : i32
    %50 = arith.addi %0, %c7_i32 : i32
    %51 = arith.index_cast %arg1 : i32 to index
    %52 = arith.index_cast %50 : i32 to index
    %53 = memref.load %arg2[%51, %52] : memref<2x8xi32, #tpu.memory_space<smem>>
    %54 = arith.index_cast %53 : i32 to index
    %c0_14 = arith.constant 0 : index
    %55 = vector.load %arg3[%54, %c0_14] : memref<64x128xf32, #tpu.memory_space<vmem>>, vector<1x128xf32>
    %c7 = arith.constant 7 : index
    %c0_15 = arith.constant 0 : index
    %56 = vector.load %arg8[%c7, %c0_15] : memref<8x128xf32, #tpu.memory_space<vmem>>, vector<1x128xf32>
    tpu.vector_store %arg8[%c7, %c0_15], %55 {strides = array<i32>} : memref<8x128xf32, #tpu.memory_space<vmem>>, vector<1x128xf32>,
    %c0_16 = arith.constant 0 : index
    %c0_17 = arith.constant 0 : index
    %57 = vector.load %arg8[%c0_16, %c0_17] : memref<8x128xf32, #tpu.memory_space<vmem>>, vector<8x128xf32>
    %c0_18 = arith.constant 0 : index
    %c0_19 = arith.constant 0 : index
    %58 = vector.load %arg4[%c0_18, %c0_19] : memref<8x128xf32, #tpu.memory_space<vmem>>, vector<8x128xf32>
    %59 = arith.addf %57, %58 : vector<8x128xf32>
    %c0_20 = arith.constant 0 : index
    %c0_21 = arith.constant 0 : index
    %60 = vector.load %arg5[%c0_20, %c0_21] : memref<1x128xf32, #tpu.memory_space<vmem>>, vector<1x128xf32>
    %c0_22 = arith.constant 0 : index
    %c0_23 = arith.constant 0 : index
    %61 = vector.load %arg6[%c0_22, %c0_23] : memref<1x128xf32, #tpu.memory_space<vmem>>, vector<1x128xf32>
    %cst = arith.constant dense<0.000000e+00> : vector<8xf32>
    %62 = vector.multi_reduction <add>, %59, %cst [1] : vector<8x128xf32> to vector<8xf32>
    %63 = vector.shape_cast %62 : vector<8xf32> to vector<8x1xf32>
    %cst_24 = arith.constant 1.280000e+02 : f32
    %64 = vector.broadcast %cst_24 : f32 to vector<8x1xf32>
    %65 = arith.divf %63, %64 : vector<8x1xf32>
    %66 = vector.broadcast %65 : vector<8x1xf32> to vector<8x128xf32>
    %67 = arith.subf %59, %66 : vector<8x128xf32>
    %68 = arith.mulf %67, %67 : vector<8x128xf32>
    %cst_25 = arith.constant dense<0.000000e+00> : vector<8xf32>
    %69 = vector.multi_reduction <add>, %68, %cst_25 [1] : vector<8x128xf32> to vector<8xf32>
    %70 = vector.shape_cast %69 : vector<8xf32> to vector<8x1xf32>
    %cst_26 = arith.constant 1.280000e+02 : f32
    %71 = vector.broadcast %cst_26 : f32 to vector<8x1xf32>
    %72 = arith.divf %70, %71 : vector<8x1xf32>
    %cst_27 = arith.constant 9.99999996E-13 : f32
    %73 = vector.broadcast %cst_27 : f32 to vector<8x1xf32>
    %74 = arith.addf %72, %73 : vector<8x1xf32>
    %75 = math.rsqrt %74 : vector<8x1xf32>
    %76 = vector.broadcast %75 : vector<8x1xf32> to vector<8x128xf32>
    %77 = arith.mulf %67, %76 : vector<8x128xf32>
    %78 = vector.broadcast %60 : vector<1x128xf32> to vector<8x128xf32>
    %79 = arith.mulf %77, %78 : vector<8x128xf32>
    %80 = vector.broadcast %61 : vector<1x128xf32> to vector<8x128xf32>
    %81 = arith.addf %79, %80 : vector<8x128xf32>
    %c0_28 = arith.constant 0 : index
    %c0_29 = arith.constant 0 : index
    %c0_30 = arith.constant 0 : index
    %82 = vector.load %arg7[%c0_28, %c0_29, %c0_30] : memref<1x8x128xf32, #tpu.memory_space<vmem>>, vector<1x8x128xf32>
    %83 = vector.shape_cast %82 : vector<1x8x128xf32> to vector<8x128xf32>
    %84 = vector.shape_cast %81 : vector<8x128xf32> to vector<1x8x128xf32>
    tpu.vector_store %arg7[%c0_28, %c0_29, %c0_30], %84 {strides = array<i32>} : memref<1x8x128xf32, #tpu.memory_space<vmem>>, vector<1x8x128xf32>,
    return
  }
  func.func @transform_0(%arg0: i32, %arg1: i32, %arg2: memref<2x8xi32, #tpu.memory_space<smem>>) -> (i32, i32) {
    %c0_i32 = arith.constant 0 : i32
    %c0_i32_0 = arith.constant 0 : i32
    %c0_i32_1 = arith.constant 0 : i32
    return %c0_i32, %c0_i32_0 : i32, i32
  }
  func.func @transform_1(%arg0: i32, %arg1: i32, %arg2: memref<2x8xi32, #tpu.memory_space<smem>>) -> (i32, i32) {
    %c0_i32 = arith.constant 0 : i32
    %c0_i32_0 = arith.constant 0 : i32
    return %arg0, %c0_i32 : i32, i32
  }
  func.func @transform_2(%arg0: i32, %arg1: i32, %arg2: memref<2x8xi32, #tpu.memory_space<smem>>) -> (i32, i32) {
    %c0_i32 = arith.constant 0 : i32
    %c0_i32_0 = arith.constant 0 : i32
    %c0_i32_1 = arith.constant 0 : i32
    return %c0_i32, %c0_i32_0 : i32, i32
  }
  func.func @transform_3(%arg0: i32, %arg1: i32, %arg2: memref<2x8xi32, #tpu.memory_space<smem>>) -> (i32, i32) {
    %c0_i32 = arith.constant 0 : i32
    %c0_i32_0 = arith.constant 0 : i32
    %c0_i32_1 = arith.constant 0 : i32
    return %c0_i32, %c0_i32_0 : i32, i32
  }
  func.func @transform_4(%arg0: i32, %arg1: i32, %arg2: memref<2x8xi32, #tpu.memory_space<smem>>) -> (i32, i32, i32) {
    %c0_i32 = arith.constant 0 : i32
    %c0_i32_0 = arith.constant 0 : i32
    return %arg1, %arg0, %c0_i32 : i32, i32, i32
  }
}

</mosaic_0001>

<bundles_post_ra>
// kernel: tpu_custom_call.1
= control target key start
LH: loop header
LB: loop body
LE: loop exit
PB: predicated region body
PF: predicated region fallthrough
CT: control target
= control target key end

     0   :  { %s971_s0 = inlined_call_operand.hbm [shape: s32[2,8], index: 0, kind: input, shape index: {}]   ;;  %s972_s1 = inlined_call_operand.hbm [shape: f32[64,128], index: 1, kind: input, shape index: {}]   ;;  %s973_s2 = inlined_call_operand.hbm [shape: f32[16,128], index: 2, kind: input, shape index: {}]   ;;  %s974_s3 = inlined_call_operand.vmem [shape: f32[1,128], index: 3, kind: input, shape index: {}]   ;;  %s975_s4 = inlined_call_operand.vmem [shape: f32[1,128], index: 4, kind: input, shape index: {}]   ;;  %s976_s5 = inlined_call_operand.hbm [shape: f32[2,8,128], index: 5, kind: output, shape index: {}]  }
   0x1   :  { %s565_s20 = scalar_lea.hbm %s971_s0, 32 }
   0x2   :  { %p566_p0 = scmp.ne.s32.totalorder %s971_s0, %s565_s20  ;;  %p569_p1 = scmp.lt.u32.totalorder %s565_s20, %s971_s0 }
   0x4   :  { %p571_p2 = pnand %p569_p1, %p566_p0 }
   0x6   :  { %574 = shalt.err (!%p571_p2)  }
   0x7   :  { %s721_s25 = smov [#allocation4]  }
   0x8   :  { %11 = dma.hbm_to_smem %s971_s0, 32, %s721_s25, [#allocation3] }
   0x9   :  { %683 = dma.done.wait [#allocation3], 32 }
   0xa   :  { %684 = vsyncadd [#allocation3], 4294967264 }
   0xb   :  { %13 = sfence }
   0xc   :  { %14 = vsyncpa [#allocation6], 0 }
   0xd   :  { %15 = vsyncpa [#allocation9], 0 }
   0xe   :  { %16 = vsyncpa [#allocation7], 0 }
   0xf   :  { %18 = vsyncpa [#allocation7 + $0x1], 0  ;;  %s769_s28 = smov 0   ;;  %s771_s29 = smov 0  }
  0x10   :  { %s773_s30 = smov 0   ;;  %s775_s6 = smov 0  }
  0x11   :  { %s777_s7 = smov 0   ;;  %s779_s8 = smov 0  }
  0x12 LB: > { %983 = sst [smem:[#allocation15_spill]] %s715_s7  ;;  %s461_s0 = sadd.s32 4294967295, %s719_s8   ;;  %s719_s8 = sphi %s779_s8, %s24_s8   ;;  %s715_s7 = sphi %s777_s7, %s995_s7   ;;  %s711_s6 = sphi %s775_s6, %s994_s6   ;;  %s707_s30 = sphi %s773_s30, %s998_s30   ;;  %s703_s29 = sphi %s771_s29, %s997_s29   ;;  %s699_s28 = sphi %s769_s28, %s996_s28  }
  0x13   : > { %s462_s9 = sadd.s32 4294967294, %s719_s8   ;;  %s33_s10 = sadd.s32 1, %s715_s7 }
  0x14   : > { %s134_s11 = sadd.s32 1, %s707_s30  ;;  %p34_p3 = scmp.ge.s32.totalorder %s33_s10, 2 }
  0x15   : > { %p144_p4 = scmp.ne.s32.totalorder %s707_s30, %s703_s29  ;;  %p145_p5 = scmp.eq.s32.totalorder %s461_s0, 1 }
  0x16   : > { %p150_p6 = scmp.ne.s32.totalorder %s703_s29, %s699_s28  ;;  %s1000_s10 = smov (%p34_p3, %s33_s10), 0 }
  0x17   : > { %984 = sst [smem:[#allocation16_spill]] %s1000_s10  ;;  %p809_p7 = por %p145_p5, %p144_p4 }
  0x18   : > { %p151_p8 = scmp.eq.s32.totalorder %s462_s9, 1  ;;  %s129_s13 = ssub.s32 %s715_s7, %s1000_s10 }
  0x19   : > { %s985_s12 = scalar_select %p809_p7, 1, 0 }
  0x1a   : > { %p463_p9 = scmp.ge.s32.totalorder %s719_s8, 1  ;;  %p132_p10 = scmp.eq.s32.totalorder %s129_s13, 0 }
  0x1b   : > { %p816_p11 = por %p151_p8, %p150_p6  ;;  %p158_p12 = scmp.lt.s32.totalorder %s719_s8, 3 }
  0x1c   : > { %s822_s15 = scalar_select %p132_p10, %s707_s30, %s134_s11  }
  0x1d   : > { %s986_s14 = scalar_select %p816_p11, 1, 0 }
  0x1e   : > { %p824_p13 = pnand %p463_p9, %p158_p12  ;;  %p828_p0 = scmp.eq.s32.totalorder %s461_s0, 0 }
  0x1f   : > { %s722_s18 = smov [#allocation5]   ;;  %s723_s21 = smov [#allocation8]  }
  0x20   : > { %s987_s16 = scalar_select %p824_p13, 1, 0 }
  0x21   : > { %s988_s17 = scalar_select %p828_p0, 1, 0 }
  0x22   : > { %p494_p1 = pneg %p824_p13  ;;  %s170_s19 = sshll.u32 %s722_s18, 4  ;;  %s171_s19 = int_to_ptr.vmem [resolvable:$true] %s170_s19 }
  0x23   : > { %s186_s22 = sshll.u32 %s723_s21, 4  ;;  %s575_s25 = scalar_lea.hbm %s972_s1, 1024  ;;  %s840_s22 = int_to_ptr.vmem [resolvable:$true] %s186_s22 }
  0x24   : > { %p836_p2 = pnand %p828_p0, %p494_p1  ;;  %p576_p3 = scmp.ne.s32.totalorder %s972_s1, %s575_s25 }
  0x25   : > { %p582_p8 = scmp.lt.u32.totalorder %s575_s25, %s972_s1 }
  0x26   : > { %p577_p4 = pneg %p836_p2 }
  0x28   : > { %p578_p5 = pnand %p577_p4, %p576_p3 }
  0x2a   : > { %p579_p6 = pneg %p578_p5 }
  0x2c   : > { %p584_p9 = pnand %p582_p8, %p579_p6 }
  0x2e   : > { %587 = shalt.err (!%p584_p9)
}
  0x2f   : > { %s588_s11 = scalar_lea.vmem %s171_s19, 1024  ;;  %p596_p11 = scmp.lt.s32.totalorder %s171_s19, %s171_s19 }
  0x30   : > { %p589_p10 = scmp.ne.s32.totalorder %s171_s19, %s588_s11  ;;  %p597_p7 = scmp.lt.s32.totalorder %s588_s11, %s588_s11 }
  0x32   : > { %p591_p12 = pnand %p589_p10, %p577_p4  ;;  %p598_p0 = por %p597_p7, %p596_p11 }
  0x34   : > { %p592_p1 = pneg %p591_p12 }
  0x36   : > { %p599_p13 = pnand %p598_p0, %p592_p1 }
  0x38   : > { %602 = shalt.err (!%p599_p13)
}
  0x39   : > { %s724_s13 = smov 128   ;;  %s725_s18 = smov 8  }
  0x3a   : > { %497 = dma.hbm_to_vmem [thread:$0]  (!%p836_p2), %s972_s1, 1024, %s171_s19, [#allocation6], %s724_s13, %s724_s13, %s725_s18  }
  0x3b   : > { %s603_s26 = scalar_lea.hbm %s973_s2, 128  ;;  %s608_s10 = scalar_lea.hbm %s973_s2, 256 }
  0x3c   : > { %p604_p3 = scmp.ne.s32.totalorder %s973_s2, %s603_s26  ;;  %p609_p13 = scmp.lt.u32.totalorder %s608_s10, %s603_s26 }
  0x3d   : > { %p610_p0 = scmp.lt.u32.totalorder %s603_s26, %s973_s2 }
  0x3e   : > { %p606_p7 = pnand %p604_p3, %p577_p4 }
  0x3f   : > { %p611_p5 = por %p610_p0, %p609_p13 }
  0x40   : > { %p607_p11 = pneg %p606_p7 }
  0x42   : > { %p612_p6 = pnand %p611_p5, %p607_p11 }
  0x44   : > { %615 = shalt.err (!%p612_p6)
}
  0x45   : > { %s616_s19 = scalar_lea.vmem %s840_s22, 128  ;;  %p624_p12 = scmp.lt.s32.totalorder %s840_s22, %s840_s22 }
  0x46   : > { %p617_p8 = scmp.ne.s32.totalorder %s840_s22, %s616_s19  ;;  %p625_p1 = scmp.lt.s32.totalorder %s616_s19, %s616_s19 }
  0x48   : > { %p619_p9 = pnand %p617_p8, %p577_p4  ;;  %p626_p3 = por %p625_p1, %p624_p12 }
  0x4a   : > { %p620_p10 = pneg %p619_p9 }
  0x4c   : > { %p627_p7 = pnand %p626_p3, %p620_p10 }
  0x4e   : > { %630 = shalt.err (!%p627_p7)
}
  0x4f   : > { %500 = dma.hbm_to_vmem [thread:$0]  (!%p836_p2), %s973_s2, 128, %s840_s22, [#allocation9]  }
  0x50   : > { %p990_p11 = scmp.ne.s32.totalorder %s987_s16, 0 }
  0x51   : > { %p991_p13 = scmp.ne.s32.totalorder (!%p990_p11), %s988_s17, 0 }
  0x52   : > { %205 = sbr.rel (%p990_p11) target bundleno = 444 (0x1bc), region = 36 }
  0x59   : > { %686 = dma.done.wait (%p991_p13), [#allocation6], 1024  }
  0x5a   : > { %688 = vsyncadd (%p991_p13), [#allocation6], 4294966272 }
  0x5b   : > { %690 = dma.done.wait (%p991_p13), [#allocation9], 128  }
  0x5c   : > { %692 = vsyncadd (%p991_p13), [#allocation9], 4294967168  ;;  %s903_s20 = sshll.u32 %s711_s6, 7  ;;  %v327_v8 = vld [vmem:[#allocation8] sm:$0xff]  ;;  %v478_v19 = vld [vmem:[%s974_s3] ss:$0 sm:$0xff] }
  0x5d   : > { %s238_s16 = sld [smem:[#allocation4 + %s903_s20]]  ;;  %s249_s22 = sadd.s32 1, %s903_s20  ;;  %v479_v21 = vld [vmem:[%s975_s4] ss:$0 sm:$0xff] }
  0x5e   : > { %s250_s13 = sld [smem:[#allocation4 + %s249_s22]]  ;;  %s261_s18 = sadd.s32 2, %s903_s20 }
  0x5f   : > { %s262_s23 = sld [smem:[#allocation4 + %s261_s18]]  ;;  %s273_s24 = sadd.s32 3, %s903_s20 }
  0x60   : > { %s274_s25 = sld [smem:[#allocation4 + %s273_s24]]  ;;  %s285_s17 = sadd.s32 4, %s903_s20 }
  0x61   : > { %s286_s26 = sld [smem:[#allocation4 + %s285_s17]]  ;;  %s297_s27 = sadd.s32 5, %s903_s20 }
  0x62   : > { %s298_s6 = sld [smem:[#allocation4 + %s297_s27]]  ;;  %s309_s0 = sadd.s32 6, %s903_s20 }
  0x63   : > { %s310_s9 = sld [smem:[#allocation4 + %s309_s0]]  ;;  %s239_s11 = scalar_lea.vmem [#allocation5], %s238_s16 }
  0x64   : > { %v240_v0 = vld [vmem:[%s239_s11] sm:$0x1]  ;;  %s321_s21 = sadd.s32 7, %s903_s20  ;;  %s251_s19 = scalar_lea.vmem [#allocation5], %s250_s13 }
  0x65   : > { %241 = vst [vmem:[#allocation2] sm:$0x1] %v240_v0  ;;  %v252_v1 = vld [vmem:[%s251_s19] sm:$0x1]  ;;  %s322_s7 = sld [smem:[#allocation4 + %s321_s21]]  ;;  %s263_s10 = scalar_lea.vmem [#allocation5], %s262_s23 }
  0x66   : > { %253 = vst [vmem:[#allocation2 + $0x1] sm:$0x1] %v252_v1  ;;  %v264_v2 = vld [vmem:[%s263_s10] sm:$0x1]  ;;  %s275_s22 = scalar_lea.vmem [#allocation5], %s274_s25  ;;  %s227_s13 = sand.u32 1, %s703_s29  }
  0x67   : > { %265 = vst [vmem:[#allocation2 + $0x2] sm:$0x1] %v264_v2  ;;  %v276_v3 = vld [vmem:[%s275_s22] sm:$0x1]  ;;  %s287_s18 = scalar_lea.vmem [#allocation5], %s286_s26  ;;  %s469_s23 = sshll.u32 %s227_s13, 3 }
  0x68   : > { %277 = vst [vmem:[#allocation2 + $0x3] sm:$0x1] %v276_v3  ;;  %v288_v4 = vld [vmem:[%s287_s18] sm:$0x1]  ;;  %s299_s24 = scalar_lea.vmem [#allocation5], %s298_s6  ;;  %s229_s0 = scalar_lea.vmem [#allocation10], %s469_s23 }
  0x69   : > { %289 = vst [vmem:[#allocation2 + $0x4] sm:$0x1] %v288_v4  ;;  %v300_v5 = vld [vmem:[%s299_s24] sm:$0x1]  ;;  %s311_s16 = scalar_lea.vmem [#allocation5], %s310_s9  ;;  %s373_s9 = sshll.u32 %s229_s0, 4  ;;  %s926_s9 = int_to_ptr.vmem [resolvable:$true] %s373_s9 }
  0x6a   : > { %301 = vst [vmem:[#allocation2 + $0x5] sm:$0x1] %v300_v5  ;;  %v312_v6 = vld [vmem:[%s311_s16] sm:$0x1]  ;;  %s924_s19 = scalar_lea.hbm %s976_s5, %s903_s20  ;;  %s631_s10 = scalar_lea.vmem %s926_s9, 128 }
  0x6b   : > { %313 = vst [vmem:[#allocation2 + $0x6] sm:$0x1] %v312_v6  ;;  %s323_s17 = scalar_lea.vmem [#allocation5], %s322_s7  ;;  %s359_s7 = scalar_lea.sflag [#allocation7], %s227_s13 }
  0x6c   : > { %v324_v7 = vld [vmem:[%s323_s17] sm:$0x1]  ;;  %p632_p2 = scmp.ne.s32.totalorder %s926_s9, %s631_s10  ;;  %p992_p4 = scmp.ne.s32.totalorder %s985_s12, 0 }
  0x6d   : > { %325 = vst [vmem:[#allocation2 + $0x7] sm:$0x1] %v324_v7  ;;  %s726_s22 = smov [#allocation10]  }
  0x6e   : > { %p633_p0 = pnand %p632_p2, %p992_p4  ;;  %s635_s18 = sshll.u32 %s726_s22, 4  ;;  %s636_s18 = int_to_ptr.vmem [resolvable:$false] %s635_s18 }
  0x6f   : > { %s637_s24 = scalar_lea.vmem %s636_s18, 256  ;;  %p638_p6 = scmp.lt.s32.totalorder %s926_s9, %s636_s18 }
  0x70   : > { %p634_p5 = pneg %p633_p0  ;;  %p639_p8 = scmp.lt.s32.totalorder %s637_s24, %s631_s10 }
  0x72   : > { %p640_p9 = por %p639_p8, %p638_p6 }
  0x74   : > { %v326_v9 = vld [vmem:[#allocation2] sm:$0xff]  ;;  %p641_p10 = pnand %p640_p9, %p634_p5 }
  0x75   : > { %v328_v10 = vadd.f32 %v327_v8, %v326_v9 }
  0x77   : > { %331 = vadd.xlane.f32.xlu0 %v328_v10 }
 0x104   : > { %v332_v11 = vpop.xlane.xlu0 %331 }
 0x105   : > { %v334_v12 = vmul.f32 0.0078125, %v332_v11 }
 0x107   : > { %v335_v13 = vsub.f32 %v328_v10, %v334_v12 }
 0x109   : > { %v336_v14 = vmul.f32 %v335_v13, %v335_v13 }
 0x10b   : > { %337 = vadd.xlane.f32.xlu0 %v336_v14 }
 0x198   : > { %v338_v15 = vpop.xlane.xlu0 %337 }
 0x199   : > { %v339_v16 = vmul.f32 0.0078125, %v338_v15 }
 0x19b   : > { %v340_v17 = vadd.f32 1e-12, %v339_v16 }
 0x19d   : > { %563 = vrsqrt.f32 %v340_v17 }
 0x1a7   : > { %v564_v18 = vpop.eup %563 }
 0x1a8   : > { %v342_v20 = vmul.f32 %v564_v18, %v335_v13 }
 0x1aa   : > { %v349_v22 = vmul.f32 %v478_v19, %v342_v20 }
 0x1ac   : > { %v356_v23 = vadd.f32 %v479_v21, %v349_v22 }
 0x1ae   : > { %357 = vst [vmem:[%s229_s0] sm:$0xff] %v356_v23 }
 0x1af   : > { %644 = shalt.err (!%p641_p10)
}
 0x1b0   : > { %s645_s20 = scalar_lea.hbm %s924_s19, 128  ;;  %s649_s13 = scalar_lea.hbm %s976_s5, 256 }
 0x1b1   : > { %p646_p12 = scmp.ne.s32.totalorder %s924_s19, %s645_s20  ;;  %p650_p7 = scmp.lt.u32.totalorder %s924_s19, %s976_s5 }
 0x1b2   : > { %p651_p11 = scmp.lt.u32.totalorder %s649_s13, %s645_s20  ;;  %p653_p2 = scmp.lt.u32.totalorder %s645_s20, %s924_s19 }
 0x1b3   : > { %p647_p1 = pnand %p646_p12, %p992_p4 }
 0x1b4   : > { %p652_p13 = por %p651_p11, %p650_p7 }
 0x1b5   : > { %p648_p3 = pneg %p647_p1 }
 0x1b6   : > { %p654_p0 = por %p653_p2, %p652_p13 }
 0x1b8   : > { %p655_p5 = pnand %p654_p0, %p648_p3 }
 0x1ba   : > { %658 = shalt.err (!%p655_p5)
}
 0x1bb   : > { %492 = dma.vmem_to_hbm [thread:$0]  (%p992_p4), %s926_s9, 128, %s924_s19, %s359_s7  }
 0x1bc PF: > { %p509_p6 = scmp.ge.s32.totalorder %s719_s8, 2  ;;  %s385_s26 = sand.u32 1, %s699_s28  }
 0x1bd   : > { %p993_p8 = scmp.ne.s32.totalorder %s986_s14, 0  ;;  %s386_s27 = scalar_lea.sflag [#allocation7], %s385_s26 }
 0x1bf   : > { %p502_p9 = pnand %p509_p6, %p993_p8 }
 0x1c1   : > { %694 = dma.done.wait (!%p502_p9), %s386_s27, 128  }
 0x1c2   : > { %696 = vsyncadd (!%p502_p9), %s386_s27, 4294967168  ;;  %s24_s8 = sadd.s32 1, %s719_s8   ;;  %s994_s6 = sld [smem:[#allocation15_spill]] }
 0x1c3   : > { %p21_p10 = scmp.ge.s32.totalorder %s24_s8, 4   ;;  %s995_s7 = sld [smem:[#allocation16_spill]] }
 0x1c4   : > { %s996_s28 = smov %s703_s29  ;;  %s997_s29 = smov %s707_s30 }
 0x1c5   : > { %s998_s30 = smov %s822_s15  ;;  %23 = sbr.rel (!%p21_p10) target bundleno = 18 (0x12), region = 86 }
 0x1cc   :  { %391 = vsyncpa [#allocation6], 1 }
 0x1cd   :  { %393 = vsyncpa [#allocation6 + $0x1], 1 }
 0x1ce   :  { %394 = vsyncpa [#allocation9], 1 }
 0x1cf   :  { %395 = vsyncpa [#allocation7], 1 }
 0x1d0   :  { %397 = vsyncpa [#allocation7 + $0x1], 1 }

</bundles_post_ra>
